<compile_context>
chip_gen: v6e
topology: v6e:2x2x1
jax: 0.10.0
libtpu: 0.0.40
codegen_flags: <defaults>
</compile_context>

<pallas_src>
import functools

import jax
import jax.numpy as jnp
from jax.experimental import pallas as pl
from jax.experimental.pallas import tpu as pltpu


def _group_norm_kernel(x_ref, w_ref, b_ref, o_ref, *, eps):
    # x_ref/o_ref: (Bn, Bg, Cg, HW);  w_ref/b_ref: (Bg, Cg, 1)
    xf = x_ref[...].astype(jnp.float32)
    denom = 1.0 / (xf.shape[2] * xf.shape[3])

    # Per-(batch, group) statistics: reduce over (channel-in-group, spatial).
    mean = jnp.sum(xf, axis=(2, 3), keepdims=True) * denom          # (Bn, Bg, 1, 1)
    d = xf - mean
    var = jnp.sum(d * d, axis=(2, 3), keepdims=True) * denom        # (Bn, Bg, 1, 1)
    inv = jax.lax.rsqrt(var + eps)                                   # (Bn, Bg, 1, 1)

    # Reuse d (= x - mean) and fold the affine: o = d * (w * inv) + b.
    w = w_ref[...].astype(jnp.float32)[None]                         # (1, Bg, Cg, 1)
    b = b_ref[...].astype(jnp.float32)[None]                         # (1, Bg, Cg, 1)
    a = w * inv                                                      # (Bn, Bg, Cg, 1)
    o_ref[...] = (d * a + b).astype(o_ref.dtype)


def _divisors(n):
    return [d for d in range(1, n + 1) if n % d == 0]


def _choose_batch(n, g, bytes_per_group, target_bytes):
    """Pick (Bn, Bg) dividing (n, g) so one block is ~target_bytes, grid >= 2."""
    bn = 1
    for d in _divisors(n):
        if d * bytes_per_group <= target_bytes:
            bn = d
    bg = 1
    for d in _divisors(g):
        if bn * d * bytes_per_group <= target_bytes:
            bg = d
    # Keep at least 2 grid steps when there are >= 2 units of work total, so
    # the grid can split across TensorCores instead of collapsing to 1 step.
    while (n // bn) * (g // bg) < 2 and (bn > 1 or bg > 1):
        if bg > 1:
            bg = max(d for d in _divisors(g) if d < bg)
        else:
            bn = max(d for d in _divisors(n) if d < bn)
    return bn, bg


def group_normal_x(x, weight, bias, *, dim_eachgroup=16, eps=1e-5,
                   target_block_bytes=2 << 20):
    """Forward pass of GroupNormalX. x: (N, C, H, W)."""
    N, C, H, W = x.shape
    groups = C // dim_eachgroup
    if groups == 0:
        groups = 1
    assert C % groups == 0, "channels must be divisible by number of groups"
    Cg = C // groups
    HW = H * W

    x_r = x.reshape(N, groups, Cg, HW)
    w_r = weight.reshape(groups, Cg, 1)
    b_r = bias.reshape(groups, Cg, 1)

    itemsize = jnp.dtype(x.dtype).itemsize
    bytes_per_group = Cg * HW * itemsize
    Bn, Bg = _choose_batch(N, groups, bytes_per_group, target_block_bytes)
    grid = (groups // Bg, N // Bn)   # group axis OUTER -> weight/bias resident inner

    block_bytes = Bn * Bg * bytes_per_group
    # in + out double-buffered plus f32 intermediates, with headroom; capped at
    # the v7x physical VMEM so one config runs on v5e/v6e/v7x.
    vmem_limit = int(min(64 << 20, max(32 << 20, 8 * block_bytes + (4 << 20))))

    kernel = functools.partial(_group_norm_kernel, eps=eps)

    out = pl.pallas_call(
        kernel,
        out_shape=jax.ShapeDtypeStruct(x_r.shape, x.dtype),
        grid_spec=pltpu.PrefetchScalarGridSpec(
            num_scalar_prefetch=0,
            grid=grid,
            in_specs=[
                pl.BlockSpec((Bn, Bg, Cg, HW), lambda g, n: (n, g, 0, 0)),
                pl.BlockSpec((Bg, Cg, 1), lambda g, n: (g, 0, 0)),
                pl.BlockSpec((Bg, Cg, 1), lambda g, n: (g, 0, 0)),
            ],
            out_specs=pl.BlockSpec((Bn, Bg, Cg, HW), lambda g, n: (n, g, 0, 0)),
        ),
        compiler_params=pltpu.CompilerParams(
            dimension_semantics=("parallel", "parallel"),
            vmem_limit_bytes=vmem_limit,
        ),
    )(x_r, w_r, b_r)

    return out.reshape(N, C, H, W)


def group_normal_x_ref(x, weight, bias, *, dim_eachgroup=16, eps=1e-5):
    """Pure-JAX reference (mirrors torch.nn.GroupNorm semantics)."""
    N, C, H, W = x.shape
    groups = max(C // dim_eachgroup, 1)
    xg = x.reshape(N, groups, -1).astype(jnp.float32)
    mean = jnp.mean(xg, axis=-1, keepdims=True)
    var = jnp.mean((xg - mean) ** 2, axis=-1, keepdims=True)
    xn = ((xg - mean) * jax.lax.rsqrt(var + eps)).reshape(N, C, H, W)
    return (xn * weight[None, :, None, None] + bias[None, :, None, None]).astype(x.dtype)


if __name__ == "__main__":
    key = jax.random.PRNGKey(0)
    kx, kw, kb = jax.random.split(key, 3)

    # Case 1: dim=32, dim_eachgroup=16 -> groups=2
    N, C, H, W = 2, 32, 16, 16
    x = jax.random.normal(kx, (N, C, H, W), dtype=jnp.float32)
    weight = jax.random.normal(kw, (C,), dtype=jnp.float32)  # nn.GroupNorm affine weight
    bias = jax.random.normal(kb, (C,), dtype=jnp.float32)    # nn.GroupNorm affine bias

    out = group_normal_x(x, weight, bias, dim_eachgroup=16)
    out = jax.block_until_ready(out)
    ref = group_normal_x_ref(x, weight, bias, dim_eachgroup=16)
    assert out.shape == (N, C, H, W)
    assert jnp.allclose(out, ref, atol=1e-4, rtol=1e-4), "mismatch vs reference (case 1)"

    # Case 2: dim=8 < dim_eachgroup -> groups clamped to 1 (LayerNorm-over-all-channels path)
    C2 = 8
    x2 = jax.random.normal(kx, (N, C2, H, W), dtype=jnp.float32)
    w2 = jax.random.normal(kw, (C2,), dtype=jnp.float32)
    b2 = jax.random.normal(kb, (C2,), dtype=jnp.float32)
    out2 = jax.block_until_ready(group_normal_x(x2, w2, b2, dim_eachgroup=16))
    ref2 = group_normal_x_ref(x2, w2, b2, dim_eachgroup=16)
    assert jnp.allclose(out2, ref2, atol=1e-4, rtol=1e-4), "mismatch vs reference (case 2)"

    print("KERNEL_OK")
</pallas_src>

<mosaic_0001>
module attributes {stable_mosaic.version = 11 : i64} {
  func.func @_group_norm_kernel(%arg0: i32, %arg1: i32, %arg2: memref<2x1x16x256xf32, #tpu.memory_space<vmem>>, %arg3: memref<1x16x1xf32, #tpu.memory_space<vmem>>, %arg4: memref<1x16x1xf32, #tpu.memory_space<vmem>>, %arg5: memref<2x1x16x256xf32, #tpu.memory_space<vmem>>) attributes {dimension_semantics = [#tpu.dimension_semantics<parallel>, #tpu.dimension_semantics<parallel>], iteration_bounds = array<i64: 2, 1>, scalar_prefetch = 0 : i64, scratch_operands = 0 : i64, tpu.core_type = #tpu.core_type<tc>, window_params = [{transform_indices = @transform_0, window_bounds = array<i64: 2, 1, 16, 256>}, {transform_indices = @transform_1, window_bounds = array<i64: 1, 16, 1>}, {transform_indices = @transform_2, window_bounds = array<i64: 1, 16, 1>}, {transform_indices = @transform_3, window_bounds = array<i64: 2, 1, 16, 256>}]} {
    %c0 = arith.constant 0 : index
    %c0_0 = arith.constant 0 : index
    %c0_1 = arith.constant 0 : index
    %c0_2 = arith.constant 0 : index
    %0 = vector.load %arg2[%c0, %c0_0, %c0_1, %c0_2] : memref<2x1x16x256xf32, #tpu.memory_space<vmem>>, vector<2x1x16x256xf32>
    %cst = arith.constant dense<0.000000e+00> : vector<2x1xf32>
    %1 = vector.multi_reduction <add>, %0, %cst [2, 3] : vector<2x1x16x256xf32> to vector<2x1xf32>
    %2 = vector.shape_cast %1 : vector<2x1xf32> to vector<2x1x1x1xf32>
    %cst_3 = arith.constant 2.44140625E-4 : f32
    %3 = vector.broadcast %cst_3 : f32 to vector<2x1x1x1xf32>
    %4 = arith.mulf %2, %3 : vector<2x1x1x1xf32>
    %5 = vector.broadcast %4 : vector<2x1x1x1xf32> to vector<2x1x16x256xf32>
    %6 = arith.subf %0, %5 : vector<2x1x16x256xf32>
    %7 = arith.mulf %6, %6 : vector<2x1x16x256xf32>
    %cst_4 = arith.constant dense<0.000000e+00> : vector<2x1xf32>
    %8 = vector.multi_reduction <add>, %7, %cst_4 [2, 3] : vector<2x1x16x256xf32> to vector<2x1xf32>
    %9 = vector.shape_cast %8 : vector<2x1xf32> to vector<2x1x1x1xf32>
    %cst_5 = arith.constant 2.44140625E-4 : f32
    %10 = vector.broadcast %cst_5 : f32 to vector<2x1x1x1xf32>
    %11 = arith.mulf %9, %10 : vector<2x1x1x1xf32>
    %cst_6 = arith.constant 9.99999974E-6 : f32
    %12 = vector.broadcast %cst_6 : f32 to vector<2x1x1x1xf32>
    %13 = arith.addf %11, %12 : vector<2x1x1x1xf32>
    %14 = math.rsqrt %13 : vector<2x1x1x1xf32>
    %c0_7 = arith.constant 0 : index
    %c0_8 = arith.constant 0 : index
    %c0_9 = arith.constant 0 : index
    %15 = vector.load %arg3[%c0_7, %c0_8, %c0_9] : memref<1x16x1xf32, #tpu.memory_space<vmem>>, vector<1x16x1xf32>
    %16 = vector.shape_cast %15 : vector<1x16x1xf32> to vector<1x1x16x1xf32>
    %c0_10 = arith.constant 0 : index
    %c0_11 = arith.constant 0 : index
    %c0_12 = arith.constant 0 : index
    %17 = vector.load %arg4[%c0_10, %c0_11, %c0_12] : memref<1x16x1xf32, #tpu.memory_space<vmem>>, vector<1x16x1xf32>
    %18 = vector.shape_cast %17 : vector<1x16x1xf32> to vector<1x1x16x1xf32>
    %19 = vector.broadcast %16 : vector<1x1x16x1xf32> to vector<2x1x16x1xf32>
    %20 = vector.broadcast %14 : vector<2x1x1x1xf32> to vector<2x1x16x1xf32>
    %21 = arith.mulf %19, %20 : vector<2x1x16x1xf32>
    %22 = vector.broadcast %21 : vector<2x1x16x1xf32> to vector<2x1x16x256xf32>
    %23 = arith.mulf %6, %22 : vector<2x1x16x256xf32>
    %24 = vector.broadcast %18 : vector<1x1x16x1xf32> to vector<2x1x16x256xf32>
    %25 = arith.addf %23, %24 : vector<2x1x16x256xf32>
    %c0_13 = arith.constant 0 : index
    %c0_14 = arith.constant 0 : index
    %c0_15 = arith.constant 0 : index
    %c0_16 = arith.constant 0 : index
    %26 = vector.load %arg5[%c0_13, %c0_14, %c0_15, %c0_16] : memref<2x1x16x256xf32, #tpu.memory_space<vmem>>, vector<2x1x16x256xf32>
    tpu.vector_store %arg5[%c0_13, %c0_14, %c0_15, %c0_16], %25 {strides = array<i32>} : memref<2x1x16x256xf32, #tpu.memory_space<vmem>>, vector<2x1x16x256xf32>,
    return
  }
  func.func @transform_0(%arg0: i32, %arg1: i32) -> (i32, i32, i32, i32) {
    %c0_i32 = arith.constant 0 : i32
    %c0_i32_0 = arith.constant 0 : i32
    %c0_i32_1 = arith.constant 0 : i32
    return %arg1, %arg0, %c0_i32, %c0_i32_0 : i32, i32, i32, i32
  }
  func.func @transform_1(%arg0: i32, %arg1: i32) -> (i32, i32, i32) {
    %c0_i32 = arith.constant 0 : i32
    %c0_i32_0 = arith.constant 0 : i32
    %c0_i32_1 = arith.constant 0 : i32
    return %arg0, %c0_i32, %c0_i32_0 : i32, i32, i32
  }
  func.func @transform_2(%arg0: i32, %arg1: i32) -> (i32, i32, i32) {
    %c0_i32 = arith.constant 0 : i32
    %c0_i32_0 = arith.constant 0 : i32
    %c0_i32_1 = arith.constant 0 : i32
    return %arg0, %c0_i32, %c0_i32_0 : i32, i32, i32
  }
  func.func @transform_3(%arg0: i32, %arg1: i32) -> (i32, i32, i32, i32) {
    %c0_i32 = arith.constant 0 : i32
    %c0_i32_0 = arith.constant 0 : i32
    %c0_i32_1 = arith.constant 0 : i32
    return %arg1, %arg0, %c0_i32, %c0_i32_0 : i32, i32, i32, i32
  }
}

</mosaic_0001>

<bundles_post_ra>
// kernel: tpu_custom_call.1
= control target key start
LH: loop header
LB: loop body
LE: loop exit
PB: predicated region body
PF: predicated region fallthrough
CT: control target
= control target key end

     0   :  { %8 = vsyncpa [#allocation3], 0  ;;  %s964_s0 = inlined_call_operand.hbm [shape: f32[2,2,16,256], index: 0, kind: input, shape index: {}]   ;;  %s965_s1 = inlined_call_operand.vmem [shape: f32[2,16,1], index: 1, kind: input, shape index: {}]   ;;  %s966_s2 = inlined_call_operand.vmem [shape: f32[2,16,1], index: 2, kind: input, shape index: {}]   ;;  %s967_s3 = inlined_call_operand.hbm [shape: f32[2,2,16,256], index: 3, kind: output, shape index: {}]  }
   0x1   :  { %10 = vsyncpa [#allocation3 + $0x1], 0 }
   0x2   :  { %11 = vsyncpa [#allocation4], 0 }
   0x3   :  { %13 = vsyncpa [#allocation4 + $0x1], 0  ;;  %s769_s12 = smov 0   ;;  %s771_s13 = smov 0  }
   0x4   :  { %s773_s14 = smov 0   ;;  %s775_s15 = smov 0  }
   0x5   :  { %s777_s16 = smov 0   ;;  %s779_s17 = smov 0  }
   0x6 LB: > { %s564_s18 = sadd.s32 4294967295, %s733_s17   ;;  %s565_s19 = sadd.s32 4294967294, %s733_s17   ;;  %s733_s17 = sphi %s779_s17, %s19_s17   ;;  %s729_s16 = sphi %s777_s16, %s976_s16   ;;  %s725_s15 = sphi %s775_s15, %s975_s15   ;;  %s721_s14 = sphi %s773_s14, %s974_s14   ;;  %s717_s13 = sphi %s771_s13, %s973_s13   ;;  %s713_s12 = sphi %s769_s12, %s972_s12  }
   0x7   : > { %s31_s20 = sadd.s32 1, %s729_s16  ;;  %s40_s21 = sadd.s32 1, %s721_s14 }
   0x8   : > { %p33_p0 = scmp.ge.s32.totalorder %s31_s20, 2  ;;  %p47_p1 = scmp.ne.s32.totalorder %s721_s14, %s717_s13 }
   0x9   : > { %p48_p2 = scmp.eq.s32.totalorder %s733_s17, 0  ;;  %p53_p3 = scmp.ne.s32.totalorder %s717_s13, %s713_s12 }
   0xa   : > { %s978_s20 = smov (%p33_p0, %s31_s20), 0  ;;  %p54_p5 = scmp.eq.s32.totalorder %s564_s18, 0 }
   0xb   : > { %p810_p4 = por %p48_p2, %p47_p1  ;;  %s36_s23 = ssub.s32 %s729_s16, %s978_s20 }
   0xc   : > { %p131_p6 = scmp.eq.s32.totalorder %s564_s18, 1  ;;  %p38_p7 = scmp.eq.s32.totalorder %s36_s23, 0 }
   0xd   : > { %p816_p8 = por %p54_p5, %p53_p3  ;;  %p137_p10 = scmp.eq.s32.totalorder %s565_s19, 1 }
   0xe   : > { %p820_p9 = por %p131_p6, %p47_p1  ;;  %p567_p12 = scmp.ge.s32.totalorder %s733_s17, 2 }
   0xf   : > { %s825_s26 = scalar_select %p38_p7, %s721_s14, %s40_s21  }
  0x10   : > { %p827_p11 = por %p137_p10, %p53_p3  ;;  %153 = sbr.rel (%p567_p12) target bundleno = 34 (0x22), region = 16 }
  0x15   : > { %s157_s28 = sand.u32 1, %s721_s14   ;;  %s585_s29 = sshll.u32 %s729_s16, 9 }
  0x16   : > { %s568_s30 = sshll.u32 %s157_s28, 6  ;;  %s170_s6 = scalar_lea.hbm %s964_s0, %s585_s29 }
  0x17   : > { %s589_s7 = scalar_select %p810_p4, [#allocation0], [#allocation10] }
  0x18   : > { %s161_s8 = scalar_lea.vmem [#allocation2], %s568_s30  ;;  %s735_s11 = smov 1024  }
  0x19   : > { %s183_s9 = sshll.u32 %s161_s8, 4  ;;  %s175_s10 = sld [smem:[%s589_s7]]   ;;  %s184_s9 = int_to_ptr.vmem [resolvable:$true] %s183_s9 }
  0x1a   : > { %590 = sst [smem:[#allocation7]] (%p810_p4), %s735_s11  ;;  %s736_s18 = smov 512  }
  0x1b   : > { %591 = sst [smem:[#allocation7 + $0x1]] (%p810_p4), %s736_s18  ;;  %s737_s19 = smov 2  }
  0x1c   : > { %592 = sst [smem:[#allocation7 + $0x2]] (%p810_p4), %s737_s19  ;;  %s738_s21 = smov 256  }
  0x1d   : > { %593 = sst [smem:[#allocation7 + $0x3]] (%p810_p4), %s738_s21  ;;  %s739_s29 = smov 16  }
  0x1e   : > { %594 = sst [smem:[#allocation7 + $0x4]] (%p810_p4), %s738_s21  ;;  %s158_s4 = scalar_lea.sflag [#allocation3], %s157_s28 }
  0x1f   : > { %s571_s23 = sshll.u32 %s175_s10, 26  ;;  %595 = sst [smem:[#allocation7 + $0x5]] (%p810_p4), %s739_s29 }
  0x20   : > { %s572_s30 = sadd.s32 134217728, %s571_s23  ;;  %s740_s5 = smov 131072  }
  0x21   : > { %596 = dma.general (%p810_p4), %s170_s6, 1024, %s184_s9, %s158_s4, %s740_s5, [#allocation7], %s572_s30, 0  }
  0x22 PF: > { %p573_p13 = scmp.ge.s32.totalorder %s733_s17, 1  ;;  %p220_p0 = scmp.lt.s32.totalorder %s733_s17, 3 }
  0x24   : > { %p221_p1 = pnand %p573_p13, %p220_p0 }
  0x25   : > { %s858_s7 = sand.u32 (!%p221_p1), 1, %s717_s13  }
  0x26   : > { %224 = sbr.rel (%p221_p1) target bundleno = 532 (0x214), region = 32  ;;  %s574_s8 = sshll.u32 (!%p221_p1), %s858_s7, 6 }
  0x27   : > { %s227_s10 = scalar_lea.sflag (!%p221_p1), [#allocation3], %s858_s7  ;;  %s230_s28 = scalar_lea.vmem (!%p221_p1), [#allocation2], %s574_s8 }
  0x2b   : > { %704 = dma.done.wait (%p816_p8), %s227_s10, 1024  }
  0x2c   : > { %706 = vsyncadd (%p816_p8), %s227_s10, 4294966272  ;;  %v275_v0 = vld [vmem:[%s230_s28] sm:$0xff]  ;;  %v276_v1 = vld [vmem:[%s230_s28 + $0x8] sm:$0xff]  ;;  %p264_p2 = scmp.lt.s32.totalorder %s725_s15, 1  ;;  %v741_v52 = vmov 0   ;;  %s262_s23 = scalar_lea.vmem [#allocation5], %s574_s8 }
  0x2d   : > { %v277_v2 = vld [vmem:[%s230_s28 + $0x10] sm:$0xff]  ;;  %v283_v3 = vadd.f32 %v276_v1, %v275_v0  ;;  %v279_v4 = vld [vmem:[%s230_s28 + $0x20] sm:$0xff]  ;;  %v280_v5 = vld [vmem:[%s230_s28 + $0x28] sm:$0xff]  ;;  %674 = vset.pattern.permute.xlu1 %v741_v52  ;;  %673 = vset.pattern.permute.xlu0 %v741_v52  ;;  %s414_s29 = scalar_lea.sflag [#allocation4], %s858_s7 }
  0x2e   : > { %v278_v6 = vld [vmem:[%s230_s28 + $0x18] sm:$0xff]  ;;  %v281_v7 = vld [vmem:[%s230_s28 + $0x30] sm:$0xff]  ;;  %v294_v8 = vadd.f32 %v280_v5, %v279_v4  ;;  %s265_s22 = scalar_select %p264_p2, %s725_s15, 1 }
  0x2f   : > { %v284_v9 = vadd.f32 %v283_v3, %v277_v2  ;;  %v282_v10 = vld [vmem:[%s230_s28 + $0x38] sm:$0xff] }
  0x30   : > { %v295_v11 = vadd.f32 %v294_v8, %v281_v7  ;;  %s586_s24 = sshll.u32 %s265_s22, 4 }
  0x31   : > { %v285_v12 = vadd.f32 %v284_v9, %v278_v6  ;;  %s905_s11 = scalar_lea.vmem %s966_s2, %s586_s24  ;;  %s268_s21 = scalar_lea.vmem %s965_s1, %s586_s24 }
  0x32   : > { %v296_v13 = vadd.f32 %v295_v11, %v282_v10  ;;  %v353_v53 = vld [vmem:[%s905_s11] sm:$0xff]  ;;  %v352_v9 = vld [vmem:[%s268_s21 + $0x8] sm:$0xff] }
  0x33   : > { %286 = vadd.xlane.f32.xlu0 %v285_v12  ;;  %v351_v8 = vld [vmem:[%s268_s21] sm:$0xff] }
  0x37   : > { %297 = vadd.xlane.f32.xlu0 %v296_v13 }
  0xbc   : > { %v287_v14 = vpop.xlane.xlu0 %286 }
  0xbd   : > { %v288_v15 = vrot.slane %v287_v14, 4 }
  0xbf   : > { %v289_v16 = vadd.f32 %v288_v15, %v287_v14 }
  0xc0   : > { %v298_v17 = vpop.xlane.xlu0 %297 }
  0xc1   : > { %v290_v18 = vrot.slane %v289_v16, 2  ;;  %v299_v19 = vrot.slane %v298_v17, 4 }
  0xc3   : > { %v291_v20 = vadd.f32 %v290_v18, %v289_v16  ;;  %v300_v21 = vadd.f32 %v299_v19, %v298_v17  ;;  %v354_v16 = vld [vmem:[%s905_s11 + $0x8] sm:$0xff] }
  0xc5   : > { %v292_v22 = vrot.slane %v291_v20, 1  ;;  %v301_v23 = vrot.slane %v300_v21, 2 }
  0xc7   : > { %v293_v24 = vadd.f32 %v292_v22, %v291_v20  ;;  %v302_v25 = vadd.f32 %v301_v23, %v300_v21 }
  0xc9   : > { %v305_v26 = vmul.f32 0.00024414063, %v293_v24  ;;  %v303_v27 = vrot.slane %v302_v25, 1 }
  0xcb   : > { %v304_v28 = vadd.f32 %v303_v27, %v302_v25  ;;  %v868_v29 = vsub.f32 %v275_v0, %v305_v26  ;;  %v870_v30 = vsub.f32 %v276_v1, %v305_v26  ;;  %v872_v31 = vsub.f32 %v277_v2, %v305_v26 }
  0xcc   : > { %v874_v32 = vsub.f32 %v278_v6, %v305_v26 }
  0xcd   : > { %v306_v33 = vmul.f32 0.00024414063, %v304_v28  ;;  %v315_v34 = vmul.f32 %v868_v29, %v868_v29  ;;  %v316_v35 = vmul.f32 %v870_v30, %v870_v30  ;;  %v317_v36 = vmul.f32 %v872_v31, %v872_v31 }
  0xce   : > { %v318_v41 = vmul.f32 %v874_v32, %v874_v32 }
  0xcf   : > { %v323_v37 = vadd.f32 %v316_v35, %v315_v34  ;;  %v882_v38 = vsub.f32 %v279_v4, %v306_v33  ;;  %v884_v39 = vsub.f32 %v280_v5, %v306_v33  ;;  %v886_v40 = vsub.f32 %v281_v7, %v306_v33 }
  0xd0   : > { %v890_v43 = vsub.f32 %v282_v10, %v306_v33 }
  0xd1   : > { %v324_v42 = vadd.f32 %v323_v37, %v317_v36  ;;  %v319_v44 = vmul.f32 %v882_v38, %v882_v38  ;;  %v320_v45 = vmul.f32 %v884_v39, %v884_v39  ;;  %v321_v47 = vmul.f32 %v886_v40, %v886_v40 }
  0xd2   : > { %v322_v49 = vmul.f32 %v890_v43, %v890_v43 }
  0xd3   : > { %v325_v46 = vadd.f32 %v324_v42, %v318_v41  ;;  %v334_v48 = vadd.f32 %v320_v45, %v319_v44 }
  0xd5   : > { %326 = vadd.xlane.f32.xlu1 %v325_v46  ;;  %v335_v50 = vadd.f32 %v334_v48, %v321_v47 }
  0xd7   : > { %v336_v51 = vadd.f32 %v335_v50, %v322_v49 }
  0xd9   : > { %337 = vadd.xlane.f32.xlu1 %v336_v51 }
  0xea   : > { %389 = vperm.xlu1 %674, %v353_v53  }
 0x15e   : > { %v327_v54 = vpop.xlane.xlu1 %326 }
 0x15f   : > { %v328_v55 = vrot.slane %v327_v54, 4 }
 0x161   : > { %v329_v56 = vadd.f32 %v328_v55, %v327_v54 }
 0x162   : > { %v338_v57 = vpop.xlane.xlu1 %337 }
 0x163   : > { %v330_v58 = vrot.slane %v329_v56, 2  ;;  %v339_v59 = vrot.slane %v338_v57, 4 }
 0x165   : > { %v331_v60 = vadd.f32 %v330_v58, %v329_v56  ;;  %v340_v61 = vadd.f32 %v339_v59, %v338_v57 }
 0x166   : > { %v390_v17 = vpop.permute.xlu1 %389 }
 0x167   : > { %v332_v62 = vrot.slane %v331_v60, 1  ;;  %v341_v63 = vrot.slane %v340_v61, 2 }
 0x169   : > { %v333_v0 = vadd.f32 %v332_v62, %v331_v60  ;;  %v342_v1 = vadd.f32 %v341_v63, %v340_v61 }
 0x16b   : > { %v345_v2 = vmul.f32 0.00024414063, %v333_v0  ;;  %v343_v3 = vrot.slane %v342_v1, 1 }
 0x16d   : > { %v347_v4 = vadd.f32 1e-05, %v345_v2  ;;  %v344_v5 = vadd.f32 %v343_v3, %v342_v1 }
 0x16f   : > { %675 = vrsqrt.f32 %v347_v4  ;;  %v346_v6 = vmul.f32 0.00024414063, %v344_v5 }
 0x171   : > { %v348_v7 = vadd.f32 1e-05, %v346_v6 }
 0x173   : > { %677 = vrsqrt.f32 %v348_v7 }
 0x17c   : > { %v676_v10 = vpop.eup %675 }
 0x17d   : > { %v355_v11 = vmul.f32 %v676_v10, %v351_v8  ;;  %v356_v12 = vmul.f32 %v676_v10, %v352_v9 }
 0x17f   : > { %361 = vperm.xlu0 %673, %v355_v11   ;;  %366 = vperm.xlu1 %674, %v356_v12  }
 0x180   : > { %v678_v13 = vpop.eup %677 }
 0x181   : > { %v357_v14 = vmul.f32 %v678_v13, %v351_v8  ;;  %v358_v15 = vmul.f32 %v678_v13, %v352_v9 }
 0x183   : > { %371 = vperm.xlu1 %674, %v357_v14  }
 0x187   : > { %376 = vperm.xlu1 %674, %v358_v15  }
 0x18b   : > { %394 = vperm.xlu1 %674, %v354_v16  }
 0x1fa   : > { %v367_v18 = vpop.permute.xlu1 %366  ;;  %v362_v19 = vpop.permute.xlu0 %361 }
 0x1fb   : > { %v379_v20 = vmul.f32 %v362_v19, %v868_v29  ;;  %v380_v21 = vmul.f32 %v362_v19, %v870_v30  ;;  %v381_v29 = vmul.f32 %v367_v18, %v872_v31  ;;  %v382_v30 = vmul.f32 %v367_v18, %v874_v32 }
 0x1fd   : > { %v397_v22 = vadd.f32 %v390_v17, %v379_v20  ;;  %v398_v23 = vadd.f32 %v390_v17, %v380_v21 }
 0x1fe   : > { %v372_v24 = vpop.permute.xlu1 %371 }
 0x1ff   : > { %405 = vst [vmem:[%s262_s23] sm:$0xff] %v397_v22  ;;  %406 = vst [vmem:[%s262_s23 + $0x8] sm:$0xff] %v398_v23  ;;  %v383_v25 = vmul.f32 %v372_v24, %v882_v38  ;;  %v384_v26 = vmul.f32 %v372_v24, %v884_v39 }
 0x201   : > { %v401_v27 = vadd.f32 %v390_v17, %v383_v25  ;;  %v402_v28 = vadd.f32 %v390_v17, %v384_v26 }
 0x202   : > { %v377_v33 = vpop.permute.xlu1 %376 }
 0x203   : > { %409 = vst [vmem:[%s262_s23 + $0x20] sm:$0xff] %v401_v27  ;;  %410 = vst [vmem:[%s262_s23 + $0x28] sm:$0xff] %v402_v28  ;;  %v385_v34 = vmul.f32 %v377_v33, %v886_v40  ;;  %v386_v35 = vmul.f32 %v377_v33, %v890_v43 }
 0x206   : > { %v395_v36 = vpop.permute.xlu1 %394 }
 0x207   : > { %v399_v37 = vadd.f32 %v395_v36, %v381_v29  ;;  %v400_v41 = vadd.f32 %v395_v36, %v382_v30  ;;  %v403_v38 = vadd.f32 %v395_v36, %v385_v34  ;;  %v404_v42 = vadd.f32 %v395_v36, %v386_v35 }
 0x209   : > { %407 = vst [vmem:[%s262_s23 + $0x10] sm:$0xff] %v399_v37  ;;  %408 = vst [vmem:[%s262_s23 + $0x18] sm:$0xff] %v400_v41 }
 0x20a   : > { %411 = vst [vmem:[%s262_s23 + $0x30] sm:$0xff] %v403_v38  ;;  %412 = vst [vmem:[%s262_s23 + $0x38] sm:$0xff] %v404_v42 }
 0x20b   : > { %s588_s30 = sshll.u32 %s725_s15, 9  ;;  %s440_s4 = sshll.u32 %s262_s23, 4  ;;  %s441_s4 = int_to_ptr.vmem [resolvable:$true] %s440_s4 }
 0x20c   : > { %s429_s10 = scalar_lea.hbm %s967_s3, %s588_s30  ;;  %s742_s28 = smov 512  }
 0x20d   : > { %598 = sst [smem:[#allocation9]] (%p820_p9), %s742_s28  ;;  %s743_s22 = smov 1024  }
 0x20e   : > { %599 = sst [smem:[#allocation9 + $0x1]] (%p820_p9), %s743_s22  ;;  %s744_s7 = smov 2  }
 0x20f   : > { %600 = sst [smem:[#allocation9 + $0x2]] (%p820_p9), %s744_s7  ;;  %s745_s24 = smov 256  }
 0x210   : > { %601 = sst [smem:[#allocation9 + $0x3]] (%p820_p9), %s745_s24  ;;  %s746_s15 = smov 16  }
 0x211   : > { %602 = sst [smem:[#allocation9 + $0x4]] (%p820_p9), %s745_s24  ;;  %s747_s6 = smov 131072  }
 0x212   : > { %603 = sst [smem:[#allocation9 + $0x5]] (%p820_p9), %s746_s15  ;;  %s748_s9 = smov 0  }
 0x213   : > { %604 = dma.general (%p820_p9), %s441_s4, 1024, %s429_s10, %s414_s29, %s747_s6, [#allocation9], %s748_s9, 0  }
 0x214 PF: > { %s468_s11 = sand.u32 1, %s713_s12   ;;  %p607_p3 = pnand %p567_p12, %p827_p11 }
 0x215   : > { %s469_s18 = scalar_lea.sflag [#allocation4], %s468_s11 }
 0x216   : > { %p608_p4 = pneg %p607_p3 }
 0x218   : > { %708 = dma.done.wait (%p608_p4), %s469_s18, 1024  }
 0x219   : > { %710 = vsyncadd (%p608_p4), %s469_s18, 4294966272  ;;  %s19_s17 = sadd.s32 1, %s733_s17   ;;  %s972_s12 = smov %s717_s13 }
 0x21a   : > { %p16_p5 = scmp.ge.s32.totalorder %s19_s17, 4   ;;  %s973_s13 = smov %s721_s14 }
 0x21b   : > { %s974_s14 = smov %s825_s26  ;;  %s975_s15 = smov %s729_s16 }
 0x21c   : > { %s976_s16 = smov %s978_s20  ;;  %18 = sbr.rel (!%p16_p5) target bundleno = 6 (0x6), region = 93 }
 0x221   :  { %474 = vsyncpa [#allocation3], 1 }
 0x222   :  { %476 = vsyncpa [#allocation3 + $0x1], 1 }
 0x223   :  { %477 = vsyncpa [#allocation4], 1 }
 0x224   :  { %479 = vsyncpa [#allocation4 + $0x1], 1 }

</bundles_post_ra>
